<compile_context>
chip_gen: v6e
topology: v6e:2x2x1
jax: 0.10.0
libtpu: 0.0.40
codegen_flags: <defaults>
</compile_context>

<pallas_src>
import functools
import math

import jax
import jax.numpy as jnp
from jax.experimental import pallas as pl
from jax.experimental.pallas import tpu as pltpu


_LANE = 128
_VMEM_BUDGET = 36 * 1024 * 1024   # tile-sizing budget (v7x has 64 MiB VMEM / TC)
_VMEM_LIMIT = 48 * 1024 * 1024    # scoped VMEM limit passed to Mosaic


def _round_up(x, m):
    return ((x + m - 1) // m) * m


def _round_down(x, m):
    return (x // m) * m


# ---------------------------------------------------------------------------
# Kernel A: fused 1x1 conv (BN scale folded) + shift + SiLU + keep-mask
# ---------------------------------------------------------------------------
def _conv1x1_bn_silu_kernel(x_ref, w_ref, sh_ref, m_ref, o_ref):
    # x_ref: (1, Cin, T)  w_ref: (Cout, Cin)  sh_ref: (Cout, 1)  m_ref: (1, T) f32
    acc = jnp.dot(w_ref[...], x_ref[0], preferred_element_type=jnp.float32)
    z = acc + sh_ref[...]
    z = z * pl.reciprocal(1.0 + jnp.exp(-z), approx=True)        # SiLU (EUP)
    o_ref[0] = (z * m_ref[...]).astype(o_ref.dtype)              # zero pad cols/strips


def conv1x1_bn_silu(x, w, shift, mask):
    """x: (N, Cin, Lp) padded-flat; w: (Cout, Cin); shift: (Cout, 1); mask: (1, Lp)."""
    n, cin, lp = x.shape
    cout = w.shape[0]
    bpe = x.dtype.itemsize

    # Budget-derived lane tile (multiple of 128, double-buffered x/out tiles).
    resident = 2 * (cout * cin * bpe + cout * 4)
    per_col = 2 * (cin + cout) * bpe + 2 * 4
    t_l = max(_LANE, _round_down(max(_VMEM_BUDGET - resident, 0) // per_col, _LANE))
    t_l = min(t_l, lp)

    grid = (n, pl.cdiv(lp, t_l))
    return pl.pallas_call(
        _conv1x1_bn_silu_kernel,
        out_shape=jax.ShapeDtypeStruct((n, cout, lp), x.dtype),
        grid=grid,
        in_specs=[
            pl.BlockSpec((1, cin, t_l), lambda i, j: (i, 0, j)),
            pl.BlockSpec((cout, cin), lambda i, j: (0, 0)),       # resident weight
            pl.BlockSpec((cout, 1), lambda i, j: (0, 0)),
            pl.BlockSpec((1, t_l), lambda i, j: (0, j)),
        ],
        out_specs=pl.BlockSpec((1, cout, t_l), lambda i, j: (i, 0, j)),
        compiler_params=pltpu.CompilerParams(
            dimension_semantics=("parallel", "parallel"),
            vmem_limit_bytes=_VMEM_LIMIT,
        ),
        cost_estimate=pl.CostEstimate(
            flops=2 * n * lp * cin * cout,
            transcendentals=2 * n * lp * cout,
            bytes_accessed=bpe * (n * cin * lp + cout * cin + n * cout * lp)
                           + 4 * (cout + lp),
        ),
    )(x, w, shift, mask)


# ---------------------------------------------------------------------------
# Kernel B: fused 3x3 conv (stride 1, pad 1; BN scale folded) + shift + SiLU
#           (+ residual add on the last layer)
# ---------------------------------------------------------------------------
def _conv3x3_bn_silu_kernel(*refs, Wp, P, Lo, has_residual):
    if has_residual:
        x_ref, w_ref, sh_ref, m_ref, res_ref, o_ref = refs
    else:
        x_ref, w_ref, sh_ref, m_ref, o_ref = refs
        res_ref = None

    tco = o_ref.shape[1]
    lp = o_ref.shape[2]

    acc = jnp.zeros((tco, Lo), jnp.float32)
    t = 0
    for kh in (-1, 0, 1):
        for kw in (-1, 0, 1):
            s = P + kh * Wp + kw                     # static start of shifted window
            xs = x_ref[0, :, s:s + Lo]               # padded layout -> no edge masks
            acc = acc + jnp.dot(w_ref[t], xs, preferred_element_type=jnp.float32)
            t += 1

    z = acc + sh_ref[...]
    z = z * pl.reciprocal(1.0 + jnp.exp(-z), approx=True)        # SiLU (EUP)
    z = z * m_ref[:, P:P + Lo]                       # re-zero the pad columns
    if has_residual:
        z = z + res_ref[0, :, P:P + Lo].astype(jnp.float32)

    o_ref[0, :, :P] = jnp.zeros((tco, P), o_ref.dtype)           # lead zero strip
    o_ref[0, :, P:P + Lo] = z.astype(o_ref.dtype)                # lane-aligned store
    o_ref[0, :, P + Lo:] = jnp.zeros((tco, lp - P - Lo), o_ref.dtype)


def conv3x3_bn_silu(x, w9, shift, mask, Wp, P, Lo, residual=None):
    """x: (N, Cin, Lp); w9: (9, Cout, Cin); shift: (Cout, 1); mask: (1, Lp) f32."""
    n, cin, lp = x.shape
    cout = w9.shape[1]
    bpe = x.dtype.itemsize

    # Budget-derived Cout tile: full Cout if it fits (no per-tile rework of the
    # resident image's shifted windows), otherwise a multiple of 8.
    fixed = 2 * cin * lp * bpe + 2 * lp * 4
    per_co = 2 * lp * bpe * (2 if residual is not None else 1) + 2 * 9 * cin * bpe + Lo * 4
    t_co = max(_VMEM_BUDGET - fixed, 0) // max(per_co, 1)
    if t_co >= cout:
        t_co = cout
    else:
        t_co = min(cout, max(8, _round_down(t_co, 8)))
    # TODO(synk): halo-tiled H blocking is required once 2*Cin*Lp itself blows the budget.

    grid = (n, pl.cdiv(cout, t_co))
    kernel = functools.partial(_conv3x3_bn_silu_kernel, Wp=Wp, P=P, Lo=Lo,
                               has_residual=residual is not None)

    in_specs = [
        pl.BlockSpec((1, cin, lp), lambda i, co: (i, 0, 0)),      # full image, resident
        pl.BlockSpec((9, t_co, cin), lambda i, co: (0, co, 0)),
        pl.BlockSpec((t_co, 1), lambda i, co: (co, 0)),
        pl.BlockSpec((1, lp), lambda i, co: (0, 0)),
    ]
    args = [x, w9, shift, mask]
    res_bytes = 0
    if residual is not None:
        in_specs.append(pl.BlockSpec((1, t_co, lp), lambda i, co: (i, co, 0)))
        args.append(residual)
        res_bytes = bpe * n * cout * lp

    return pl.pallas_call(
        kernel,
        out_shape=jax.ShapeDtypeStruct((n, cout, lp), x.dtype),
        grid=grid,
        in_specs=in_specs,
        out_specs=pl.BlockSpec((1, t_co, lp), lambda i, co: (i, co, 0)),
        compiler_params=pltpu.CompilerParams(
            # Split the batch across TensorCores; keep Cout tiles sequential so both
            # cores do not each DMA the same resident image.
            dimension_semantics=("parallel", "arbitrary"),
            vmem_limit_bytes=_VMEM_LIMIT,
        ),
        cost_estimate=pl.CostEstimate(
            flops=2 * 9 * n * Lo * cin * cout,
            transcendentals=2 * n * Lo * cout,
            bytes_accessed=bpe * (n * cin * lp + 9 * cout * cin + n * cout * lp)
                           + 4 * (cout + lp) + res_bytes,
        ),
    )(*args)


# ---------------------------------------------------------------------------
# Module
# ---------------------------------------------------------------------------
def _init_conv_bn(key, cout, cin, k, dtype):
    kw, kg, kb, km, kv = jax.random.split(key, 5)
    bound = 1.0 / math.sqrt(cin * k * k)
    w = jax.random.uniform(kw, (cout, cin, k, k), dtype, minval=-bound, maxval=bound)
    gamma = jax.random.uniform(kg, (cout,), dtype, minval=0.5, maxval=1.5)
    beta = jax.random.uniform(kb, (cout,), dtype, minval=-0.1, maxval=0.1)
    mean = jax.random.uniform(km, (cout,), dtype, minval=-0.1, maxval=0.1)
    var = jax.random.uniform(kv, (cout,), dtype, minval=0.5, maxval=1.5)
    eps = 1e-3
    scale = gamma / jnp.sqrt(var + eps)
    shift = beta - mean * scale
    return w, scale, shift


class C1:
    """Pallas port of ultralytics C1 (Conv(1x1) -> n x Conv(3x3) -> +residual).

    Conv = Conv2d(no bias) + BatchNorm2d (eval mode, folded) + SiLU.
    """

    def __init__(self, c1, c2, n=1, *, key=None, dtype=jnp.float32, mxu_dtype=None):
        self.c1, self.c2, self.n = c1, c2, n
        self.mxu_dtype = dtype if mxu_dtype is None else mxu_dtype
        if key is None:
            key = jax.random.PRNGKey(0)
        keys = jax.random.split(key, n + 1)

        # cv1: 1x1 conv (reference copies kept unfolded / f32).
        w1, sc1, sh1 = _init_conv_bn(keys[0], c2, c1, 1, dtype)
        self.w1, self.scale1, self.shift1 = w1, sc1, sh1
        self.w1_k = (w1.reshape(c2, c1) * sc1[:, None]).astype(self.mxu_dtype)
        self.sh1_k = sh1.reshape(c2, 1).astype(jnp.float32)

        # m: n x 3x3 convs.
        self.m_params_ref = []     # (w (c2,c2,3,3), scale (c2,), shift (c2,))
        self.m_params = []         # (w9 (9,c2,c2) scale-folded, shift (c2,1) f32)
        for i in range(n):
            w, sc, sh = _init_conv_bn(keys[i + 1], c2, c2, 3, dtype)
            self.m_params_ref.append((w, sc, sh))
            w9 = jnp.transpose(w, (2, 3, 0, 1)).reshape(9, c2, c2)
            w9 = (w9 * sc[None, :, None]).astype(self.mxu_dtype)
            self.m_params.append((w9, sh.reshape(c2, 1).astype(jnp.float32)))

    def __call__(self, x):
        n, c1, h, w = x.shape
        assert c1 == self.c1
        wp = w + 2
        lo = h * wp
        p = _round_up(wp + 1, _LANE)               # lane-aligned lead zero strip
        lp = p + _round_up(lo + wp + 1, _LANE)     # total padded-flat length (x128)

        # Padded-flat layout: zero column each side of every row, flatten, zero
        # strips at both flat ends -> every 3x3 tap is a plain static slice.
        xw = jnp.pad(x, ((0, 0), (0, 0), (0, 0), (1, 1)))
        xf = xw.reshape(n, c1, lo)
        xp = jnp.pad(xf, ((0, 0), (0, 0), (p, lp - p - lo))).astype(self.mxu_dtype)

        # f32 keep-mask: 1 on real pixels, 0 on pad columns / pad strips.
        q = jnp.arange(lp)
        col = (q - p) % wp
        keep = (q >= p) & (q < p + lo) & (col >= 1) & (col <= w)
        mask = keep.astype(jnp.float32).reshape(1, lp)

        y = conv1x1_bn_silu(xp, self.w1_k, self.sh1_k, mask)

        if not self.m_params:                      # n == 0: m is identity
            out = y + y
        else:
            z = y
            for (w9, sh) in self.m_params[:-1]:
                z = conv3x3_bn_silu(z, w9, sh, mask, wp, p, lo)
            w9, sh = self.m_params[-1]
            out = conv3x3_bn_silu(z, w9, sh, mask, wp, p, lo, residual=y)  # m(y)+y

        # Strip padding: (N, C2, Lp) -> (N, C2, H, W).
        out = out[:, :, p:p + lo].reshape(n, self.c2, h, wp)[:, :, :, 1:w + 1]
        return out.astype(x.dtype)


# ---------------------------------------------------------------------------
# Pure-JAX reference (lax.conv) for correctness checking
# ---------------------------------------------------------------------------
def _reference(x, mod):
    def conv_bn_silu(inp, w, scale, shift, padding):
        y = jax.lax.conv_general_dilated(
            inp, w, window_strides=(1, 1), padding=padding,
            dimension_numbers=("NCHW", "OIHW", "NCHW"))
        y = y * scale[None, :, None, None] + shift[None, :, None, None]
        return y * jax.nn.sigmoid(y)

    y = conv_bn_silu(x, mod.w1, mod.scale1, mod.shift1, "VALID")
    z = y
    for (w, sc, sh) in mod.m_params_ref:
        z = conv_bn_silu(z, w, sc, sh, [(1, 1), (1, 1)])
    return z + y


if __name__ == "__main__":
    key = jax.random.PRNGKey(0)
    kx, kp = jax.random.split(key)

    N, C_IN, C_OUT, H, W = 2, 4, 8, 16, 16
    x = jax.random.normal(kx, (N, C_IN, H, W), jnp.float32)

    # n = 1 (default), f32 MXU path.
    mod = C1(C_IN, C_OUT, n=1, key=kp)
    y = jax.block_until_ready(jax.jit(mod.__call__)(x))
    y_ref = jax.block_until_ready(_reference(x, mod))
    assert y.shape == (N, C_OUT, H, W), y.shape
    err1 = float(jnp.max(jnp.abs(y - y_ref)))
    assert jnp.allclose(y, y_ref, atol=2e-3, rtol=2e-3), f"f32 n=1 mismatch: {err1}"

    # n = 2: exercises the chained padded-layout handoff (no-residual 3x3 variant).
    mod2 = C1(C_IN, C_OUT, n=2, key=kp)
    y2 = jax.block_until_ready(jax.jit(mod2.__call__)(x))
    y2_ref = jax.block_until_ready(_reference(x, mod2))
    err2 = float(jnp.max(jnp.abs(y2 - y2_ref)))
    assert jnp.allclose(y2, y2_ref, atol=2e-3, rtol=2e-3), f"f32 n=2 mismatch: {err2}"

    # Optional bf16-MXU path (bf16 weights/activations, f32 accumulation).
    mod_bf = C1(C_IN, C_OUT, n=1, key=kp, mxu_dtype=jnp.bfloat16)
    y_bf = jax.block_until_ready(jax.jit(mod_bf.__call__)(x))
    err_bf = float(jnp.max(jnp.abs(y_bf.astype(jnp.float32) - y_ref)))
    assert err_bf < 0.25, f"bf16 mismatch: {err_bf}"

    print("KERNEL_OK")
</pallas_src>

<mosaic_0001>
module attributes {stable_mosaic.version = 11 : i64} {
  func.func @_conv1x1_bn_silu_kernel(%arg0: i32, %arg1: i32, %arg2: memref<1x4x512xf32, #tpu.memory_space<vmem>>, %arg3: memref<8x4xf32, #tpu.memory_space<vmem>>, %arg4: memref<8x1xf32, #tpu.memory_space<vmem>>, %arg5: memref<1x512xf32, #tpu.memory_space<vmem>>, %arg6: memref<1x8x512xf32, #tpu.memory_space<vmem>>) attributes {dimension_semantics = [#tpu.dimension_semantics<parallel>, #tpu.dimension_semantics<parallel>], iteration_bounds = array<i64: 2, 1>, scalar_prefetch = 0 : i64, scratch_operands = 0 : i64, tpu.core_type = #tpu.core_type<tc>, window_params = [{transform_indices = @transform_0, window_bounds = array<i64: 1, 4, 512>}, {pipeline_mode = #tpu.pipeline_mode<synchronous>, transform_indices = @transform_1, window_bounds = array<i64: 8, 4>}, {pipeline_mode = #tpu.pipeline_mode<synchronous>, transform_indices = @transform_2, window_bounds = array<i64: 8, 1>}, {transform_indices = @transform_3, window_bounds = array<i64: 1, 512>}, {transform_indices = @transform_4, window_bounds = array<i64: 1, 8, 512>}]} {
    %c0 = arith.constant 0 : index
    %c0_0 = arith.constant 0 : index
    %0 = vector.load %arg3[%c0, %c0_0] : memref<8x4xf32, #tpu.memory_space<vmem>>, vector<8x4xf32>
    %c0_1 = arith.constant 0 : index
    %c0_2 = arith.constant 0 : index
    %c0_3 = arith.constant 0 : index
    %1 = vector.load %arg2[%c0_1, %c0_2, %c0_3] : memref<1x4x512xf32, #tpu.memory_space<vmem>>, vector<1x4x512xf32>
    %2 = vector.shape_cast %1 : vector<1x4x512xf32> to vector<4x512xf32>
    %cst = arith.constant dense<0.000000e+00> : vector<8x512xf32>
    %3 = tpu.matmul %0, %2, %cst {dimension_numbers = #tpu.dot_dimension_numbers<[1], [0], [0], [1], [0, 0, 1, 1], [], []>} : vector<8x4xf32>, vector<4x512xf32>, vector<8x512xf32> -> vector<8x512xf32>
    %c0_4 = arith.constant 0 : index
    %c0_5 = arith.constant 0 : index
    %4 = vector.load %arg4[%c0_4, %c0_5] : memref<8x1xf32, #tpu.memory_space<vmem>>, vector<8x1xf32>
    %5 = vector.broadcast %4 : vector<8x1xf32> to vector<8x512xf32>
    %6 = arith.addf %3, %5 : vector<8x512xf32>
    %cst_6 = arith.constant 0.000000e+00 : f32
    %7 = vector.broadcast %cst_6 : f32 to vector<8x512xf32>
    %8 = arith.subf %7, %6 : vector<8x512xf32>
    %9 = math.exp %8 : vector<8x512xf32>
    %cst_7 = arith.constant 1.000000e+00 : f32
    %10 = vector.broadcast %cst_7 : f32 to vector<8x512xf32>
    %11 = arith.addf %10, %9 : vector<8x512xf32>
    %12 = tpu.reciprocal %11 {approx = true} : vector<8x512xf32> -> vector<8x512xf32>
    %13 = arith.mulf %6, %12 : vector<8x512xf32>
    %c0_8 = arith.constant 0 : index
    %c0_9 = arith.constant 0 : index
    %14 = vector.load %arg5[%c0_8, %c0_9] : memref<1x512xf32, #tpu.memory_space<vmem>>, vector<1x512xf32>
    %15 = vector.broadcast %14 : vector<1x512xf32> to vector<8x512xf32>
    %16 = arith.mulf %13, %15 : vector<8x512xf32>
    %c0_10 = arith.constant 0 : index
    %c0_11 = arith.constant 0 : index
    %c0_12 = arith.constant 0 : index
    %17 = vector.load %arg6[%c0_10, %c0_11, %c0_12] : memref<1x8x512xf32, #tpu.memory_space<vmem>>, vector<1x8x512xf32>
    %18 = vector.shape_cast %17 : vector<1x8x512xf32> to vector<8x512xf32>
    %19 = vector.shape_cast %16 : vector<8x512xf32> to vector<1x8x512xf32>
    tpu.vector_store %arg6[%c0_10, %c0_11, %c0_12], %19 {strides = array<i32>} : memref<1x8x512xf32, #tpu.memory_space<vmem>>, vector<1x8x512xf32>,
    return
  }
  func.func @transform_0(%arg0: i32, %arg1: i32) -> (i32, i32, i32) {
    %c0_i32 = arith.constant 0 : i32
    %c0_i32_0 = arith.constant 0 : i32
    return %arg0, %c0_i32, %arg1 : i32, i32, i32
  }
  func.func @transform_1(%arg0: i32, %arg1: i32) -> (i32, i32) {
    %c0_i32 = arith.constant 0 : i32
    %c0_i32_0 = arith.constant 0 : i32
    %c0_i32_1 = arith.constant 0 : i32
    return %c0_i32, %c0_i32_0 : i32, i32
  }
  func.func @transform_2(%arg0: i32, %arg1: i32) -> (i32, i32) {
    %c0_i32 = arith.constant 0 : i32
    %c0_i32_0 = arith.constant 0 : i32
    %c0_i32_1 = arith.constant 0 : i32
    return %c0_i32, %c0_i32_0 : i32, i32
  }
  func.func @transform_3(%arg0: i32, %arg1: i32) -> (i32, i32) {
    %c0_i32 = arith.constant 0 : i32
    %c0_i32_0 = arith.constant 0 : i32
    return %c0_i32, %arg1 : i32, i32
  }
  func.func @transform_4(%arg0: i32, %arg1: i32) -> (i32, i32, i32) {
    %c0_i32 = arith.constant 0 : i32
    %c0_i32_0 = arith.constant 0 : i32
    return %arg0, %c0_i32, %arg1 : i32, i32, i32
  }
}

module attributes {stable_mosaic.version = 11 : i64} {
  func.func @_conv3x3_bn_silu_kernel(%arg0: i32, %arg1: i32, %arg2: memref<1x8x512xf32, #tpu.memory_space<vmem>>, %arg3: memref<9x8x8xf32, #tpu.memory_space<vmem>>, %arg4: memref<8x1xf32, #tpu.memory_space<vmem>>, %arg5: memref<1x512xf32, #tpu.memory_space<vmem>>, %arg6: memref<1x8x512xf32, #tpu.memory_space<vmem>>, %arg7: memref<1x8x512xf32, #tpu.memory_space<vmem>>) attributes {dimension_semantics = [#tpu.dimension_semantics<parallel>, #tpu.dimension_semantics<arbitrary>], iteration_bounds = array<i64: 2, 1>, scalar_prefetch = 0 : i64, scratch_operands = 0 : i64, tpu.core_type = #tpu.core_type<tc>, window_params = [{transform_indices = @transform_0, window_bounds = array<i64: 1, 8, 512>}, {transform_indices = @transform_1, window_bounds = array<i64: 9, 8, 8>}, {transform_indices = @transform_2, window_bounds = array<i64: 8, 1>}, {pipeline_mode = #tpu.pipeline_mode<synchronous>, transform_indices = @transform_3, window_bounds = array<i64: 1, 512>}, {transform_indices = @transform_4, window_bounds = array<i64: 1, 8, 512>}, {transform_indices = @transform_5, window_bounds = array<i64: 1, 8, 512>}]} {
    %cst = arith.constant 0.000000e+00 : f32
    %0 = vector.broadcast %cst : f32 to vector<8x288xf32>
    %c0 = arith.constant 0 : index
    %c0_0 = arith.constant 0 : index
    %c109 = arith.constant 109 : index
    %1 = vector.load %arg2[%c0, %c0_0, %c109] : memref<1x8x512xf32, #tpu.memory_space<vmem>>, vector<1x8x288xf32>
    %2 = vector.shape_cast %1 : vector<1x8x288xf32> to vector<8x288xf32>
    %c0_1 = arith.constant 0 : index
    %c0_2 = arith.constant 0 : index
    %c0_3 = arith.constant 0 : index
    %3 = vector.load %arg3[%c0_1, %c0_2, %c0_3] : memref<9x8x8xf32, #tpu.memory_space<vmem>>, vector<1x8x8xf32>
    %4 = vector.shape_cast %3 : vector<1x8x8xf32> to vector<8x8xf32>
    %cst_4 = arith.constant dense<0.000000e+00> : vector<8x288xf32>
    %5 = tpu.matmul %4, %2, %cst_4 {dimension_numbers = #tpu.dot_dimension_numbers<[1], [0], [0], [1], [0, 0, 1, 1], [], []>} : vector<8x8xf32>, vector<8x288xf32>, vector<8x288xf32> -> vector<8x288xf32>
    %6 = arith.addf %0, %5 : vector<8x288xf32>
    %c0_5 = arith.constant 0 : index
    %c0_6 = arith.constant 0 : index
    %c110 = arith.constant 110 : index
    %7 = vector.load %arg2[%c0_5, %c0_6, %c110] : memref<1x8x512xf32, #tpu.memory_space<vmem>>, vector<1x8x288xf32>
    %8 = vector.shape_cast %7 : vector<1x8x288xf32> to vector<8x288xf32>
    %c1 = arith.constant 1 : index
    %c0_7 = arith.constant 0 : index
    %c0_8 = arith.constant 0 : index
    %9 = vector.load %arg3[%c1, %c0_7, %c0_8] : memref<9x8x8xf32, #tpu.memory_space<vmem>>, vector<1x8x8xf32>
    %10 = vector.shape_cast %9 : vector<1x8x8xf32> to vector<8x8xf32>
    %cst_9 = arith.constant dense<0.000000e+00> : vector<8x288xf32>
    %11 = tpu.matmul %10, %8, %cst_9 {dimension_numbers = #tpu.dot_dimension_numbers<[1], [0], [0], [1], [0, 0, 1, 1], [], []>} : vector<8x8xf32>, vector<8x288xf32>, vector<8x288xf32> -> vector<8x288xf32>
    %12 = arith.addf %6, %11 : vector<8x288xf32>
    %c0_10 = arith.constant 0 : index
    %c0_11 = arith.constant 0 : index
    %c111 = arith.constant 111 : index
    %13 = vector.load %arg2[%c0_10, %c0_11, %c111] : memref<1x8x512xf32, #tpu.memory_space<vmem>>, vector<1x8x288xf32>
    %14 = vector.shape_cast %13 : vector<1x8x288xf32> to vector<8x288xf32>
    %c2 = arith.constant 2 : index
    %c0_12 = arith.constant 0 : index
    %c0_13 = arith.constant 0 : index
    %15 = vector.load %arg3[%c2, %c0_12, %c0_13] : memref<9x8x8xf32, #tpu.memory_space<vmem>>, vector<1x8x8xf32>
    %16 = vector.shape_cast %15 : vector<1x8x8xf32> to vector<8x8xf32>
    %cst_14 = arith.constant dense<0.000000e+00> : vector<8x288xf32>
    %17 = tpu.matmul %16, %14, %cst_14 {dimension_numbers = #tpu.dot_dimension_numbers<[1], [0], [0], [1], [0, 0, 1, 1], [], []>} : vector<8x8xf32>, vector<8x288xf32>, vector<8x288xf32> -> vector<8x288xf32>
    %18 = arith.addf %12, %17 : vector<8x288xf32>
    %c0_15 = arith.constant 0 : index
    %c0_16 = arith.constant 0 : index
    %c127 = arith.constant 127 : index
    %19 = vector.load %arg2[%c0_15, %c0_16, %c127] : memref<1x8x512xf32, #tpu.memory_space<vmem>>, vector<1x8x288xf32>
    %20 = vector.shape_cast %19 : vector<1x8x288xf32> to vector<8x288xf32>
    %c3 = arith.constant 3 : index
    %c0_17 = arith.constant 0 : index
    %c0_18 = arith.constant 0 : index
    %21 = vector.load %arg3[%c3, %c0_17, %c0_18] : memref<9x8x8xf32, #tpu.memory_space<vmem>>, vector<1x8x8xf32>
    %22 = vector.shape_cast %21 : vector<1x8x8xf32> to vector<8x8xf32>
    %cst_19 = arith.constant dense<0.000000e+00> : vector<8x288xf32>
    %23 = tpu.matmul %22, %20, %cst_19 {dimension_numbers = #tpu.dot_dimension_numbers<[1], [0], [0], [1], [0, 0, 1, 1], [], []>} : vector<8x8xf32>, vector<8x288xf32>, vector<8x288xf32> -> vector<8x288xf32>
    %24 = arith.addf %18, %23 : vector<8x288xf32>
    %c0_20 = arith.constant 0 : index
    %c0_21 = arith.constant 0 : index
    %c128 = arith.constant 128 : index
    %25 = vector.load %arg2[%c0_20, %c0_21, %c128] : memref<1x8x512xf32, #tpu.memory_space<vmem>>, vector<1x8x288xf32>
    %26 = vector.shape_cast %25 : vector<1x8x288xf32> to vector<8x288xf32>
    %c4 = arith.constant 4 : index
    %c0_22 = arith.constant 0 : index
    %c0_23 = arith.constant 0 : index
    %27 = vector.load %arg3[%c4, %c0_22, %c0_23] : memref<9x8x8xf32, #tpu.memory_space<vmem>>, vector<1x8x8xf32>
    %28 = vector.shape_cast %27 : vector<1x8x8xf32> to vector<8x8xf32>
    %cst_24 = arith.constant dense<0.000000e+00> : vector<8x288xf32>
    %29 = tpu.matmul %28, %26, %cst_24 {dimension_numbers = #tpu.dot_dimension_numbers<[1], [0], [0], [1], [0, 0, 1, 1], [], []>} : vector<8x8xf32>, vector<8x288xf32>, vector<8x288xf32> -> vector<8x288xf32>
    %30 = arith.addf %24, %29 : vector<8x288xf32>
    %c0_25 = arith.constant 0 : index
    %c0_26 = arith.constant 0 : index
    %c129 = arith.constant 129 : index
    %31 = vector.load %arg2[%c0_25, %c0_26, %c129] : memref<1x8x512xf32, #tpu.memory_space<vmem>>, vector<1x8x288xf32>
    %32 = vector.shape_cast %31 : vector<1x8x288xf32> to vector<8x288xf32>
    %c5 = arith.constant 5 : index
    %c0_27 = arith.constant 0 : index
    %c0_28 = arith.constant 0 : index
    %33 = vector.load %arg3[%c5, %c0_27, %c0_28] : memref<9x8x8xf32, #tpu.memory_space<vmem>>, vector<1x8x8xf32>
    %34 = vector.shape_cast %33 : vector<1x8x8xf32> to vector<8x8xf32>
    %cst_29 = arith.constant dense<0.000000e+00> : vector<8x288xf32>
    %35 = tpu.matmul %34, %32, %cst_29 {dimension_numbers = #tpu.dot_dimension_numbers<[1], [0], [0], [1], [0, 0, 1, 1], [], []>} : vector<8x8xf32>, vector<8x288xf32>, vector<8x288xf32> -> vector<8x288xf32>
    %36 = arith.addf %30, %35 : vector<8x288xf32>
    %c0_30 = arith.constant 0 : index
    %c0_31 = arith.constant 0 : index
    %c145 = arith.constant 145 : index
    %37 = vector.load %arg2[%c0_30, %c0_31, %c145] : memref<1x8x512xf32, #tpu.memory_space<vmem>>, vector<1x8x288xf32>
    %38 = vector.shape_cast %37 : vector<1x8x288xf32> to vector<8x288xf32>
    %c6 = arith.constant 6 : index
    %c0_32 = arith.constant 0 : index
    %c0_33 = arith.constant 0 : index
    %39 = vector.load %arg3[%c6, %c0_32, %c0_33] : memref<9x8x8xf32, #tpu.memory_space<vmem>>, vector<1x8x8xf32>
    %40 = vector.shape_cast %39 : vector<1x8x8xf32> to vector<8x8xf32>
    %cst_34 = arith.constant dense<0.000000e+00> : vector<8x288xf32>
    %41 = tpu.matmul %40, %38, %cst_34 {dimension_numbers = #tpu.dot_dimension_numbers<[1], [0], [0], [1], [0, 0, 1, 1], [], []>} : vector<8x8xf32>, vector<8x288xf32>, vector<8x288xf32> -> vector<8x288xf32>
    %42 = arith.addf %36, %41 : vector<8x288xf32>
    %c0_35 = arith.constant 0 : index
    %c0_36 = arith.constant 0 : index
    %c146 = arith.constant 146 : index
    %43 = vector.load %arg2[%c0_35, %c0_36, %c146] : memref<1x8x512xf32, #tpu.memory_space<vmem>>, vector<1x8x288xf32>
    %44 = vector.shape_cast %43 : vector<1x8x288xf32> to vector<8x288xf32>
    %c7 = arith.constant 7 : index
    %c0_37 = arith.constant 0 : index
    %c0_38 = arith.constant 0 : index
    %45 = vector.load %arg3[%c7, %c0_37, %c0_38] : memref<9x8x8xf32, #tpu.memory_space<vmem>>, vector<1x8x8xf32>
    %46 = vector.shape_cast %45 : vector<1x8x8xf32> to vector<8x8xf32>
    %cst_39 = arith.constant dense<0.000000e+00> : vector<8x288xf32>
    %47 = tpu.matmul %46, %44, %cst_39 {dimension_numbers = #tpu.dot_dimension_numbers<[1], [0], [0], [1], [0, 0, 1, 1], [], []>} : vector<8x8xf32>, vector<8x288xf32>, vector<8x288xf32> -> vector<8x288xf32>
    %48 = arith.addf %42, %47 : vector<8x288xf32>
    %c0_40 = arith.constant 0 : index
    %c0_41 = arith.constant 0 : index
    %c147 = arith.constant 147 : index
    %49 = vector.load %arg2[%c0_40, %c0_41, %c147] : memref<1x8x512xf32, #tpu.memory_space<vmem>>, vector<1x8x288xf32>
    %50 = vector.shape_cast %49 : vector<1x8x288xf32> to vector<8x288xf32>
    %c8 = arith.constant 8 : index
    %c0_42 = arith.constant 0 : index
    %c0_43 = arith.constant 0 : index
    %51 = vector.load %arg3[%c8, %c0_42, %c0_43] : memref<9x8x8xf32, #tpu.memory_space<vmem>>, vector<1x8x8xf32>
    %52 = vector.shape_cast %51 : vector<1x8x8xf32> to vector<8x8xf32>
    %cst_44 = arith.constant dense<0.000000e+00> : vector<8x288xf32>
    %53 = tpu.matmul %52, %50, %cst_44 {dimension_numbers = #tpu.dot_dimension_numbers<[1], [0], [0], [1], [0, 0, 1, 1], [], []>} : vector<8x8xf32>, vector<8x288xf32>, vector<8x288xf32> -> vector<8x288xf32>
    %54 = arith.addf %48, %53 : vector<8x288xf32>
    %c0_45 = arith.constant 0 : index
    %c0_46 = arith.constant 0 : index
    %55 = vector.load %arg4[%c0_45, %c0_46] : memref<8x1xf32, #tpu.memory_space<vmem>>, vector<8x1xf32>
    %56 = vector.broadcast %55 : vector<8x1xf32> to vector<8x288xf32>
    %57 = arith.addf %54, %56 : vector<8x288xf32>
    %cst_47 = arith.constant 0.000000e+00 : f32
    %58 = vector.broadcast %cst_47 : f32 to vector<8x288xf32>
    %59 = arith.subf %58, %57 : vector<8x288xf32>
    %60 = math.exp %59 : vector<8x288xf32>
    %cst_48 = arith.constant 1.000000e+00 : f32
    %61 = vector.broadcast %cst_48 : f32 to vector<8x288xf32>
    %62 = arith.addf %61, %60 : vector<8x288xf32>
    %63 = tpu.reciprocal %62 {approx = true} : vector<8x288xf32> -> vector<8x288xf32>
    %64 = arith.mulf %57, %63 : vector<8x288xf32>
    %c0_49 = arith.constant 0 : index
    %c128_50 = arith.constant 128 : index
    %65 = vector.load %arg5[%c0_49, %c128_50] : memref<1x512xf32, #tpu.memory_space<vmem>>, vector<1x288xf32>
    %66 = vector.broadcast %65 : vector<1x288xf32> to vector<8x288xf32>
    %67 = arith.mulf %64, %66 : vector<8x288xf32>
    %c0_51 = arith.constant 0 : index
    %c0_52 = arith.constant 0 : index
    %c128_53 = arith.constant 128 : index
    %68 = vector.load %arg6[%c0_51, %c0_52, %c128_53] : memref<1x8x512xf32, #tpu.memory_space<vmem>>, vector<1x8x288xf32>
    %69 = vector.shape_cast %68 : vector<1x8x288xf32> to vector<8x288xf32>
    %70 = arith.addf %67, %69 : vector<8x288xf32>
    %cst_54 = arith.constant 0.000000e+00 : f32
    %71 = vector.broadcast %cst_54 : f32 to vector<8x128xf32>
    %c0_55 = arith.constant 0 : index
    %c0_56 = arith.constant 0 : index
    %c0_57 = arith.constant 0 : index
    %72 = vector.load %arg7[%c0_55, %c0_56, %c0_57] : memref<1x8x512xf32, #tpu.memory_space<vmem>>, vector<1x8x128xf32>
    %73 = vector.shape_cast %72 : vector<1x8x128xf32> to vector<8x128xf32>
    %74 = vector.shape_cast %71 : vector<8x128xf32> to vector<1x8x128xf32>
    tpu.vector_store %arg7[%c0_55, %c0_56, %c0_57], %74 {strides = array<i32>} : memref<1x8x512xf32, #tpu.memory_space<vmem>>, vector<1x8x128xf32>,
    %c0_58 = arith.constant 0 : index
    %c0_59 = arith.constant 0 : index
    %c128_60 = arith.constant 128 : index
    %75 = vector.load %arg7[%c0_58, %c0_59, %c128_60] : memref<1x8x512xf32, #tpu.memory_space<vmem>>, vector<1x8x288xf32>
    %76 = vector.shape_cast %75 : vector<1x8x288xf32> to vector<8x288xf32>
    %77 = vector.shape_cast %70 : vector<8x288xf32> to vector<1x8x288xf32>
    tpu.vector_store %arg7[%c0_58, %c0_59, %c128_60], %77 {strides = array<i32>} : memref<1x8x512xf32, #tpu.memory_space<vmem>>, vector<1x8x288xf32>,
    %cst_61 = arith.constant 0.000000e+00 : f32
    %78 = vector.broadcast %cst_61 : f32 to vector<8x96xf32>
    %c0_62 = arith.constant 0 : index
    %c0_63 = arith.constant 0 : index
    %c416 = arith.constant 416 : index
    %79 = vector.load %arg7[%c0_62, %c0_63, %c416] : memref<1x8x512xf32, #tpu.memory_space<vmem>>, vector<1x8x96xf32>
    %80 = vector.shape_cast %79 : vector<1x8x96xf32> to vector<8x96xf32>
    %81 = vector.shape_cast %78 : vector<8x96xf32> to vector<1x8x96xf32>
    tpu.vector_store %arg7[%c0_62, %c0_63, %c416], %81 {strides = array<i32>} : memref<1x8x512xf32, #tpu.memory_space<vmem>>, vector<1x8x96xf32>,
    return
  }
  func.func @transform_0(%arg0: i32, %arg1: i32) -> (i32, i32, i32) {
    %c0_i32 = arith.constant 0 : i32
    %c0_i32_0 = arith.constant 0 : i32
    %c0_i32_1 = arith.constant 0 : i32
    return %arg0, %c0_i32, %c0_i32_0 : i32, i32, i32
  }
  func.func @transform_1(%arg0: i32, %arg1: i32) -> (i32, i32, i32) {
    %c0_i32 = arith.constant 0 : i32
    %c0_i32_0 = arith.constant 0 : i32
    %c0_i32_1 = arith.constant 0 : i32
    return %c0_i32, %arg1, %c0_i32_0 : i32, i32, i32
  }
  func.func @transform_2(%arg0: i32, %arg1: i32) -> (i32, i32) {
    %c0_i32 = arith.constant 0 : i32
    %c0_i32_0 = arith.constant 0 : i32
    return %arg1, %c0_i32 : i32, i32
  }
  func.func @transform_3(%arg0: i32, %arg1: i32) -> (i32, i32) {
    %c0_i32 = arith.constant 0 : i32
    %c0_i32_0 = arith.constant 0 : i32
    %c0_i32_1 = arith.constant 0 : i32
    return %c0_i32, %c0_i32_0 : i32, i32
  }
  func.func @transform_4(%arg0: i32, %arg1: i32) -> (i32, i32, i32) {
    %c0_i32 = arith.constant 0 : i32
    %c0_i32_0 = arith.constant 0 : i32
    return %arg0, %arg1, %c0_i32 : i32, i32, i32
  }
  func.func @transform_5(%arg0: i32, %arg1: i32) -> (i32, i32, i32) {
    %c0_i32 = arith.constant 0 : i32
    %c0_i32_0 = arith.constant 0 : i32
    return %arg0, %arg1, %c0_i32 : i32, i32, i32
  }
}

</mosaic_0001>

<bundles_post_ra>
// kernel: a_call__.2
= control target key start
LH: loop header
LB: loop body
LE: loop exit
PB: predicated region body
PF: predicated region fallthrough
CT: control target
= control target key end

     0   :  { %s693_s15 = smov 0   ;;  %s695_s16 = smov 0   ;;  %s739_s0 = inlined_call_operand.vmem [shape: f32[2,4,512], index: 0, kind: input, shape index: {}]   ;;  %s740_s1 = inlined_call_operand.vmem [shape: f32[8,4], index: 1, kind: input, shape index: {}]   ;;  %s741_s2 = inlined_call_operand.vmem [shape: f32[8,1], index: 2, kind: input, shape index: {}]   ;;  %s742_s3 = inlined_call_operand.vmem [shape: f32[1,512], index: 3, kind: input, shape index: {}]   ;;  %s743_s4 = inlined_call_operand.vmem [shape: f32[2,8,512], index: 4, kind: output, shape index: {}]  }
   0x1   :  { %s697_s17 = smov 0  }
   0x2 LB: > { %s26_s18 = sadd.s32 1, %s660_s16  ;;  %p582_p0 = scmp.ge.s32.totalorder %s664_s17, 1  ;;  %s664_s17 = sphi %s697_s17, %s14_s17   ;;  %s660_s16 = sphi %s695_s16, %s745_s16   ;;  %s656_s15 = sphi %s693_s15, %s744_s15  }
   0x3   : > { %p28_p1 = scmp.ge.s32.totalorder %s26_s18, 2  ;;  %p193_p2 = scmp.lt.s32.totalorder %s664_s17, 3 }
   0x5   : > { %s747_s18 = smov (%p28_p1, %s26_s18), 0  ;;  %p194_p3 = pnand %p582_p0, %p193_p2 }
   0x6   : > { %p232_p4 = scmp.lt.s32.totalorder (!%p194_p3), %s656_s15, 1 }
   0x7   : > { %197 = sbr.rel (%p194_p3) target bundleno = 257 (0x101), region = 36 }
   0xc   : > { %v666_v0 = vmov 0.0   ;;  %v259_v1 = vld [vmem:[%s741_s2] sm:$0xff]  ;;  %s749_s15 = smov (!%p232_p4, %s656_s15), 1  ;;  %v667_v2 = vmov 0   ;;  %vm273_vm0 = vcmask 1043456   ;;  %vm269_vm1 = vcmask 31744  }
   0xd   : > { %346 = vmatprep.mubr.f32.mxu0 %v666_v0  ;;  %417 = vmatprep.mubr.f32.mxu1 %v666_v0  ;;  %s595_s21 = sshll.u32 %s749_s15, 4  ;;  %v256_v7 = vld [vmem:[%s740_s1] sm:$0xff]  ;;  %v450_v31 = vlaneseq  ;;  %s596_s29 = sshll.u32 %s749_s15, 5 }
   0xe   : > { %623 = vset.pattern.permute.xlu0 %v667_v2  ;;  %s239_s24 = scalar_lea.vmem %s739_s0, %s595_s21  ;;  %v448_v36 = vld [vmem:[%s742_s3] sm:$0xf]  ;;  %s254_s6 = scalar_lea.vmem %s743_s4, %s596_s29 }
   0xf   : > { %262 = vperm.xlu0 %623, %v259_v1   ;;  %v257_v3 = vld [vmem:[%s239_s24] sm:$0xff]  ;;  %v258_v4 = vld [vmem:[%s239_s24 + $0x8] sm:$0xff]  ;;  %v451_v34 = vshrl.u32 %v450_v31, 7 }
  0x10   : > { %v267_v5 = vcombine.high %v257_v3, %v257_v3  ;;  %v268_v6 = vcombine.high %v258_v4, %v258_v4 }
  0x11   : > { %v452_v35 = vsub.s32 0, %v451_v34  ;;  %v460_v37 = vsub.s32 2, %v451_v34  ;;  %v456_v38 = vsub.s32 1, %v451_v34  ;;  %v464_v39 = vsub.s32 3, %v451_v34 }
  0x12   : > { %587 = vmatprep.subr.msk.mxu0 %vm273_vm0, %v267_v5  ;;  %590 = vmatprep.subr.msk.mxu1 %vm273_vm0, %v268_v6 }
  0x13   : > { %588 = vmatpush1.msk.msra.mxu0 %vm273_vm0, %v257_v3  ;;  %591 = vmatpush1.msk.msra.mxu1 %vm273_vm0, %v258_v4  ;;  %v453_v40 = vrot.slane %v448_v36, %v452_v35  ;;  %v461_v42 = vrot.slane %v448_v36, %v460_v37  ;;  %v457_v45 = vrot.slane %v448_v36, %v456_v38 }
  0x14   : > { %589 = vmatmul.mubr.msk.f32.vlgmr.msra.gmra.mxu0 %vm269_vm1, %v256_v7  ;;  %592 = vmatmul.mubr.msk.f32.vlgmr.msra.gmra.mxu1 %vm269_vm1, %v256_v7  ;;  %v465_v48 = vrot.slane %v448_v36, %v464_v39 }
  0x8a   : > { %v263_v8 = vpop.permute.xlu0 %262 }
  0xd4   : > { %v348_v9 = vpop.f32.mrf.mxu0  ;;  %v419_v10 = vpop.f32.mrf.mxu1 }
  0xd5   : > { %v349_v11 = vadd.f32 %v348_v9, %v263_v8  ;;  %v420_v12 = vadd.f32 %v419_v10, %v263_v8 }
  0xd6   : > { %v350_v13 = vpop.f32.mrf.mxu0  ;;  %v421_v14 = vpop.f32.mrf.mxu1 }
  0xd7   : > { %v424_v15 = vsub.f32 0.0, %v349_v11  ;;  %v426_v16 = vsub.f32 0.0, %v420_v12  ;;  %v351_v17 = vadd.f32 %v350_v13, %v263_v8  ;;  %v422_v18 = vadd.f32 %v421_v14, %v263_v8 }
  0xd9   : > { %v428_v19 = vmul.f32 1.442695, %v424_v15  ;;  %v432_v20 = vmul.f32 1.442695, %v426_v16  ;;  %v425_v21 = vsub.f32 0.0, %v351_v17  ;;  %v427_v22 = vsub.f32 0.0, %v422_v18 }
  0xdb   : > { %626 = vpow2.f32 %v428_v19  ;;  %v430_v23 = vmul.f32 1.442695, %v425_v21  ;;  %v434_v24 = vmul.f32 1.442695, %v427_v22 }
  0xdc   : > { %628 = vpow2.f32 %v432_v20 }
  0xdd   : > { %630 = vpow2.f32 %v430_v23 }
  0xde   : > { %632 = vpow2.f32 %v434_v24 }
  0xe8   : > { %v627_v25 = vpop.eup %626 }
  0xe9   : > { %v629_v26 = vpop.eup %628  ;;  %v436_v27 = vadd.f32 1.0, %v627_v25 }
  0xea   : > { %v631_v28 = vpop.eup %630  ;;  %v438_v29 = vadd.f32 1.0, %v629_v26 }
  0xeb   : > { %v633_v30 = vpop.eup %632  ;;  %634 = vrcp.f32 %v436_v27  ;;  %v437_v32 = vadd.f32 1.0, %v631_v28 }
  0xec   : > { %636 = vrcp.f32 %v438_v29  ;;  %v439_v33 = vadd.f32 1.0, %v633_v30 }
  0xed   : > { %638 = vrcp.f32 %v437_v32 }
  0xee   : > { %640 = vrcp.f32 %v439_v33 }
  0xf8   : > { %v635_v41 = vpop.eup %634 }
  0xf9   : > { %v637_v43 = vpop.eup %636  ;;  %v444_v44 = vmul.f32 %v635_v41, %v349_v11 }
  0xfa   : > { %v639_v46 = vpop.eup %638  ;;  %v446_v47 = vmul.f32 %v637_v43, %v420_v12 }
  0xfb   : > { %v641_v49 = vpop.eup %640  ;;  %v470_v50 = vmul.f32 %v453_v40, %v444_v44  ;;  %v445_v51 = vmul.f32 %v639_v46, %v351_v17 }
  0xfc   : > { %v472_v52 = vmul.f32 %v461_v42, %v446_v47  ;;  %v447_v53 = vmul.f32 %v641_v49, %v422_v18 }
  0xfd   : > { %474 = vst [vmem:[%s254_s6] sm:$0xff] %v470_v50  ;;  %v471_v54 = vmul.f32 %v457_v45, %v445_v51 }
  0xfe   : > { %476 = vst [vmem:[%s254_s6 + $0x10] sm:$0xff] %v472_v52  ;;  %v473_v55 = vmul.f32 %v465_v48, %v447_v53 }
  0xff   : > { %475 = vst [vmem:[%s254_s6 + $0x8] sm:$0xff] %v471_v54 }
 0x100   : > { %477 = vst [vmem:[%s254_s6 + $0x18] sm:$0xff] %v473_v55 }
 0x101 PF: > { %s14_s17 = sadd.s32 1, %s664_s17   ;;  %s744_s15 = smov %s660_s16 }
 0x102   : > { %p11_p5 = scmp.ge.s32.totalorder %s14_s17, 4   ;;  %s745_s16 = smov %s747_s18 }
 0x104   :  { %13 = sbr.rel (!%p11_p5) target bundleno = 2 (0x2), region = 69 }

// kernel: a_call__.3
= control target key start
LH: loop header
LB: loop body
LE: loop exit
PB: predicated region body
PF: predicated region fallthrough
CT: control target
= control target key end

     0   :  { %s2181_s18 = smov 0   ;;  %s2183_s19 = smov 0   ;;  %s2355_s0 = inlined_call_operand.vmem [shape: f32[2,8,512], index: 0, kind: input, shape index: {}, may-alias: {0,4}]   ;;  %s2356_s1 = inlined_call_operand.vmem [shape: f32[9,8,8], index: 1, kind: input, shape index: {}]   ;;  %s2357_s2 = inlined_call_operand.vmem [shape: f32[8,1], index: 2, kind: input, shape index: {}]   ;;  %s2358_s3 = inlined_call_operand.vmem [shape: f32[1,512], index: 3, kind: input, shape index: {}]   ;;  %s2359_s4 = inlined_call_operand.vmem [shape: f32[2,8,512], index: 4, kind: input, shape index: {}, may-alias: {0,4}]   ;;  %s2360_s5 = inlined_call_operand.vmem [shape: f32[2,8,512], index: 5, kind: output, shape index: {}]  }
   0x1   :  { %s2185_s20 = smov 0  }
   0x2 LB: > { %s27_s21 = sadd.s32 1, %s2134_s19  ;;  %p1967_p0 = scmp.ge.s32.totalorder %s2138_s20, 1  ;;  %s2138_s20 = sphi %s2185_s20, %s15_s20   ;;  %s2134_s19 = sphi %s2183_s19, %s2362_s19   ;;  %s2130_s18 = sphi %s2181_s18, %s2361_s18  }
   0x3   : > { %p29_p1 = scmp.ge.s32.totalorder %s27_s21, 2  ;;  %p235_p2 = scmp.lt.s32.totalorder %s2138_s20, 3 }
   0x5   : > { %s2364_s21 = smov (%p29_p1, %s27_s21), 0  ;;  %p236_p3 = pnand %p1967_p0, %p235_p2 }
   0x6   : > { %p284_p4 = scmp.lt.s32.totalorder (!%p236_p3), %s2130_s18, 1  ;;  %s2142_s26 = smov (!%p236_p3), 18  }
   0x7   : > { %239 = sbr.rel (%p236_p3) target bundleno = 426 (0x1aa), region = 40  ;;  %s2143_s27 = smov (!%p236_p3), 19  }
   0x8   : > { %s2144_s28 = smov (!%p236_p3), 17   ;;  %s2145_s29 = smov (!%p236_p3), 1  }
   0x9   : > { %s2146_s30 = smov (!%p236_p3), 127   ;;  %s2147_s6 = smov (!%p236_p3), 111  }
   0xa   : > { %s2149_s7 = smov (!%p236_p3), 110   ;;  %s2150_s8 = smov (!%p236_p3), 109  }
   0xc   : > { %v2140_v0 = vmov 0.0   ;;  %s2366_s18 = smov (!%p284_p4, %s2130_s18), 1  ;;  %vm2141_vm0 = vmmov 0   ;;  %v2148_v5 = vmov 0   ;;  %v1766_v6 = vld [vmem:[%s2357_s2] sm:$0xff]  ;;  %vm334_vm1 = vcmask 146432  }
   0xd   : > { %2023 = vmatprep.subr.mxu1 %v2140_v0  ;;  %409 = vmatprep.mubr.f32.mxu0 %v2140_v0  ;;  %s2201_s22 = sshll.u32 %s2366_s18, 5  ;;  %v1974_v13 = vld [vmem:[%s2356_s1 + $0x8] sm:$0xff]  ;;  %vm341_vm2 = vcmask 64512   ;;  %vm494_vm3 = vcmask 154624   ;;  %v319_v20 = vld [vmem:[%s2356_s1] sm:$0xff]  ;;  %vm655_vm4 = vcmask 138240  }
   0xe   : > { %s288_s25 = scalar_lea.vmem %s2355_s0, %s2201_s22  ;;  %2025 = vmatprep.mubr.msk.f32.mxu1 %vm2141_vm0, %v2140_v0  ;;  %2103 = vset.pattern.permute.xlu0 %v2148_v5  ;;  %v1979_v28 = vld [vmem:[%s2356_s1 + $0x10] sm:$0xff]  ;;  %vm819_vm5 = vcmask 7168   ;;  %v1982_v36 = vld [vmem:[%s2356_s1 + $0x18] sm:$0xff]  ;;  %vm1130_vm6 = vcmask 1039360   ;;  %v1985_v42 = vld [vmem:[%s2356_s1 + $0x20] sm:$0xff]  ;;  %vm1291_vm7 = vcmask 908288   ;;  %s2330_s10 = scalar_lea.vmem %s2360_s5, %s2201_s22 }
   0xf   : > { %v2207_v1 = vld [vmem:[%s288_s25 + $0x8] sm:$0xff]  ;;  %v315_v2 = vld [vmem:[%s288_s25] sm:$0xff]  ;;  %v2212_v3 = vld [vmem:[%s288_s25 + $0x10] sm:$0xff]  ;;  %vm1452_vm8 = vcmask 900096   ;;  %vm1613_vm9 = vcmask 891904   ;;  %1819 = vst [vmem:[%s2330_s10] sm:$0xff] %v2140_v0  ;;  %s305_s15 = scalar_lea.vmem %s2359_s4, %s2201_s22  ;;  %vm1822_vm10 = vcmask 261120  }
  0x10   : > { %328 = vrot.lane.b32.xlu0 %v2207_v1, %s2142_s26  ;;  %326 = vrot.lane.b32.xlu1 %v315_v2, %s2142_s26  ;;  %v2214_v4 = vld [vmem:[%s288_s25 + $0x18] sm:$0xff]  ;;  %v1988_v46 = vld [vmem:[%s2356_s1 + $0x28] sm:$0xff]  ;;  %vm1824_vm11 = vcmask 1047808  }
  0x11   : > { %v1991_v51 = vld [vmem:[%s2356_s1 + $0x30] sm:$0xff]  ;;  %v1994_v55 = vld [vmem:[%s2356_s1 + $0x38] sm:$0xff]  ;;  %v1997_v59 = vld [vmem:[%s2356_s1 + $0x40] sm:$0xff] }
  0x14   : > { %330 = vrot.lane.b32.xlu0 %v2212_v3, %s2142_s26  ;;  %332 = vrot.lane.b32.xlu1 %v2214_v4, %s2142_s26 }
  0x18   : > { %488 = vrot.lane.b32.xlu0 %v2207_v1, %s2143_s27  ;;  %490 = vrot.lane.b32.xlu1 %v2212_v3, %s2143_s27 }
  0x1c   : > { %486 = vrot.lane.b32.xlu0 %v315_v2, %s2143_s27  ;;  %492 = vrot.lane.b32.xlu1 %v2214_v4, %s2143_s27 }
  0x20   : > { %649 = vrot.lane.b32.xlu0 %v2207_v1, %s2144_s28  ;;  %651 = vrot.lane.b32.xlu1 %v2212_v3, %s2144_s28 }
  0x24   : > { %647 = vrot.lane.b32.xlu0 %v315_v2, %s2144_s28  ;;  %653 = vrot.lane.b32.xlu1 %v2214_v4, %s2144_s28 }
  0x28   : > { %813 = vrot.lane.b32.xlu0 %v2207_v1, %s2145_s29  ;;  %815 = vrot.lane.b32.xlu1 %v2212_v3, %s2145_s29 }
  0x2c   : > { %811 = vrot.lane.b32.xlu0 %v315_v2, %s2145_s29  ;;  %817 = vrot.lane.b32.xlu1 %v2214_v4, %s2145_s29 }
  0x30   : > { %1126 = vrot.lane.b32.xlu0 %v2212_v3, %s2146_s30  ;;  %1128 = vrot.lane.b32.xlu1 %v2214_v4, %s2146_s30 }
  0x34   : > { %1124 = vrot.lane.b32.xlu0 %v2207_v1, %s2146_s30  ;;  %1287 = vrot.lane.b32.xlu1 %v2212_v3, %s2147_s6 }
  0x38   : > { %1289 = vrot.lane.b32.xlu0 %v2214_v4, %s2147_s6  ;;  %1285 = vrot.lane.b32.xlu1 %v2207_v1, %s2147_s6 }
  0x3c   : > { %1448 = vrot.lane.b32.xlu0 %v2212_v3, %s2149_s7  ;;  %1450 = vrot.lane.b32.xlu1 %v2214_v4, %s2149_s7 }
  0x40   : > { %1446 = vrot.lane.b32.xlu0 %v2207_v1, %s2149_s7  ;;  %1609 = vrot.lane.b32.xlu1 %v2212_v3, %s2150_s8 }
  0x44   : > { %1611 = vrot.lane.b32.xlu0 %v2214_v4, %s2150_s8  ;;  %1607 = vrot.lane.b32.xlu1 %v2207_v1, %s2150_s8 }
  0x48   : > { %1769 = vperm.xlu0 %2103, %v1766_v6  }
  0x82   : > { %v329_v7 = vpop.permute.xlu0 %328  ;;  %v327_v8 = vpop.permute.xlu1 %326 }
  0x83   : > { %v335_v14 = vsel %vm334_vm1, %v327_v8, %v329_v7 }
  0x86   : > { %v331_v9 = vpop.permute.xlu0 %330  ;;  %v333_v10 = vpop.permute.xlu1 %332 }
  0x87   : > { %v336_v11 = vsel %vm334_vm1, %v329_v7, %v331_v9  ;;  %v337_v12 = vsel %vm334_vm1, %v331_v9, %v333_v10 }
  0x88   : > { %375 = vmatprep.subr.mxu0 %v336_v11  ;;  %2024 = vmatpush3.msra.mxu1 %v337_v12 }
  0x89   : > { %376 = vmatpush1.msra.mxu0 %v335_v14  ;;  %2028 = vmatprep.subr.mxu1 %v2140_v0 }
  0x8a   : > { %v489_v15 = vpop.permute.xlu0 %488  ;;  %v491_v16 = vpop.permute.xlu1 %490  ;;  %1975 = vmatmul.mubr.msk.f32.vlgmr.msra.gmra.mxu0 %vm341_vm2, %v1974_v13  ;;  %2026 = vmatmul.mubr.msk.f32.vlgmr.msra.gmra.mxu1 %vm341_vm2, %v1974_v13 }
  0x8b   : > { %v496_v17 = vsel %vm494_vm3, %v489_v15, %v491_v16  ;;  %568 = vmatprep.mubr.f32.mxu0 %v2140_v0  ;;  %2030 = vmatprep.mubr.msk.f32.mxu1 %vm2141_vm0, %v2140_v0 }
  0x8c   : > { %534 = vmatprep.subr.mxu0 %v496_v17 }
  0x8e   : > { %v487_v18 = vpop.permute.xlu0 %486  ;;  %v493_v19 = vpop.permute.xlu1 %492 }
  0x8f   : > { %v495_v21 = vsel %vm494_vm3, %v487_v18, %v489_v15  ;;  %v497_v22 = vsel %vm494_vm3, %v491_v16, %v493_v19 }
  0x90   : > { %535 = vmatpush1.msra.mxu0 %v495_v21  ;;  %2029 = vmatpush3.msra.mxu1 %v497_v22 }
  0x91   : > { %2033 = vmatprep.subr.mxu1 %v2140_v0  ;;  %1977 = vmatmul.mubr.msk.f32.vlgmr.msra.gmra.mxu0 %vm341_vm2, %v319_v20 }
  0x92   : > { %v650_v23 = vpop.permute.xlu0 %649  ;;  %v652_v24 = vpop.permute.xlu1 %651  ;;  %2031 = vmatmul.mubr.msk.f32.vlgmr.msra.gmra.mxu1 %vm341_vm2, %v319_v20  ;;  %729 = vmatprep.mubr.f32.mxu0 %v2140_v0 }
  0x93   : > { %v657_v25 = vsel %vm655_vm4, %v650_v23, %v652_v24  ;;  %2035 = vmatprep.mubr.msk.f32.mxu1 %vm2141_vm0, %v2140_v0 }
  0x94   : > { %695 = vmatprep.subr.mxu0 %v657_v25 }
  0x96   : > { %v648_v26 = vpop.permute.xlu0 %647  ;;  %v654_v27 = vpop.permute.xlu1 %653 }
  0x97   : > { %v656_v29 = vsel %vm655_vm4, %v648_v26, %v650_v23  ;;  %v658_v30 = vsel %vm655_vm4, %v652_v24, %v654_v27 }
  0x98   : > { %696 = vmatpush1.msra.mxu0 %v656_v29  ;;  %2034 = vmatpush3.msra.mxu1 %v658_v30 }
  0x99   : > { %1980 = vmatmul.mubr.msk.f32.vlgmr.msra.gmra.mxu0 %vm341_vm2, %v1979_v28  ;;  %2036 = vmatmul.mubr.msk.f32.vlgmr.msra.gmra.mxu1 %vm341_vm2, %v1979_v28 }
  0x9a   : > { %v814_v31 = vpop.permute.xlu0 %813  ;;  %v816_v32 = vpop.permute.xlu1 %815  ;;  %2038 = vmatprep.subr.mxu1 %v2140_v0  ;;  %893 = vmatprep.mubr.f32.mxu0 %v2140_v0 }
  0x9b   : > { %v821_v33 = vsel %vm819_vm5, %v814_v31, %v816_v32  ;;  %2040 = vmatprep.mubr.msk.f32.mxu1 %vm2141_vm0, %v2140_v0 }
  0x9c   : > { %859 = vmatprep.subr.mxu0 %v821_v33 }
  0x9e   : > { %v812_v34 = vpop.permute.xlu0 %811  ;;  %v818_v35 = vpop.permute.xlu1 %817 }
  0x9f   : > { %v820_v37 = vsel %vm819_vm5, %v812_v34, %v814_v31  ;;  %v822_v38 = vsel %vm819_vm5, %v816_v32, %v818_v35 }
  0xa0   : > { %860 = vmatpush1.msra.mxu0 %v820_v37  ;;  %2039 = vmatpush3.msra.mxu1 %v822_v38 }
  0xa1   : > { %1983 = vmatmul.mubr.msk.f32.vlgmr.msra.gmra.mxu0 %vm341_vm2, %v1982_v36  ;;  %2041 = vmatmul.mubr.msk.f32.vlgmr.msra.gmra.mxu1 %vm341_vm2, %v1982_v36 }
  0xa2   : > { %v1127_v39 = vpop.permute.xlu0 %1126  ;;  %1008 = vmatprep.subr.mxu0 %v2212_v3  ;;  %2043 = vmatprep.subr.mxu1 %v2140_v0  ;;  %v1129_v40 = vpop.permute.xlu1 %1128 }
  0xa3   : > { %1009 = vmatpush1.msra.mxu0 %v2207_v1  ;;  %2044 = vmatpush3.msra.mxu1 %v2214_v4  ;;  %v1132_v41 = vsel %vm1130_vm6, %v1127_v39, %v1129_v40 }
  0xa4   : > { %1042 = vmatprep.mubr.f32.mxu0 %v2140_v0  ;;  %2045 = vmatprep.mubr.msk.f32.mxu1 %vm2141_vm0, %v2140_v0 }
  0xa5   : > { %1169 = vmatprep.subr.mxu0 %v1132_v41  ;;  %2048 = vmatprep.subr.mxu1 %v2140_v0 }
  0xa6   : > { %1986 = vmatmul.mubr.msk.f32.vlgmr.msra.gmra.mxu0 %vm341_vm2, %v1985_v42  ;;  %2046 = vmatmul.mubr.msk.f32.vlgmr.msra.gmra.mxu1 %vm341_vm2, %v1985_v42  ;;  %v1125_v43 = vpop.permute.xlu0 %1124  ;;  %v1288_v44 = vpop.permute.xlu1 %1287 }
  0xa7   : > { %2049 = vmatpush3.msra.mxu1 %v1129_v40  ;;  %v1131_v45 = vsel %vm1130_vm6, %v1125_v43, %v1127_v39  ;;  %1203 = vmatprep.mubr.f32.mxu0 %v2140_v0 }
  0xa8   : > { %1170 = vmatpush1.msra.mxu0 %v1131_v45  ;;  %2050 = vmatprep.mubr.msk.f32.mxu1 %vm2141_vm0, %v2140_v0 }
  0xa9   : > { %2053 = vmatprep.subr.mxu1 %v2140_v0 }
  0xaa   : > { %1989 = vmatmul.mubr.msk.f32.vlgmr.msra.gmra.mxu0 %vm341_vm2, %v1988_v46  ;;  %2051 = vmatmul.mubr.msk.f32.vlgmr.msra.gmra.mxu1 %vm341_vm2, %v1988_v46  ;;  %v1290_v47 = vpop.permute.xlu0 %1289  ;;  %v1286_v48 = vpop.permute.xlu1 %1285 }
  0xab   : > { %v1292_v49 = vsel %vm1291_vm7, %v1286_v48, %v1288_v44  ;;  %2054 = vmatpush3.msra.mxu1 %v1290_v47  ;;  %v1293_v50 = vsel %vm1291_vm7, %v1288_v44, %v1290_v47  ;;  %2055 = vmatprep.mubr.msk.f32.mxu1 %vm2141_vm0, %v2140_v0 }
  0xac   : > { %1330 = vmatprep.subr.mxu0 %v1293_v50  ;;  %1364 = vmatprep.mubr.f32.mxu0 %v2140_v0 }
  0xad   : > { %1331 = vmatpush1.msra.mxu0 %v1292_v49  ;;  %2058 = vmatprep.subr.mxu1 %v2140_v0 }
  0xae   : > { %2056 = vmatmul.mubr.msk.f32.vlgmr.msra.gmra.mxu1 %vm341_vm2, %v1991_v51  ;;  %v1449_v52 = vpop.permute.xlu0 %1448  ;;  %1992 = vmatmul.mubr.msk.f32.vlgmr.msra.gmra.mxu0 %vm341_vm2, %v1991_v51  ;;  %v1451_v53 = vpop.permute.xlu1 %1450 }
  0xaf   : > { %v1454_v54 = vsel %vm1452_vm8, %v1449_v52, %v1451_v53  ;;  %2059 = vmatpush3.msra.mxu1 %v1451_v53  ;;  %2060 = vmatprep.mubr.msk.f32.mxu1 %vm2141_vm0, %v2140_v0 }
  0xb0   : > { %1491 = vmatprep.subr.mxu0 %v1454_v54  ;;  %1525 = vmatprep.mubr.f32.mxu0 %v2140_v0 }
  0xb1   : > { %2063 = vmatprep.subr.mxu1 %v2140_v0 }
  0xb2   : > { %2061 = vmatmul.mubr.msk.f32.vlgmr.msra.gmra.mxu1 %vm341_vm2, %v1994_v55  ;;  %v1447_v56 = vpop.permute.xlu0 %1446  ;;  %v1610_v57 = vpop.permute.xlu1 %1609 }
  0xb3   : > { %v1453_v58 = vsel %vm1452_vm8, %v1447_v56, %v1449_v52  ;;  %2065 = vmatprep.mubr.msk.f32.mxu1 %vm2141_vm0, %v2140_v0 }
  0xb4   : > { %1492 = vmatpush1.msra.mxu0 %v1453_v58 }
  0xb5   : > { %1995 = vmatmul.mubr.msk.f32.vlgmr.msra.gmra.mxu0 %vm341_vm2, %v1994_v55 }
  0xb6   : > { %v1612_v60 = vpop.permute.xlu0 %1611  ;;  %v1608_v61 = vpop.permute.xlu1 %1607  ;;  %1686 = vmatprep.mubr.f32.mxu0 %v2140_v0 }
  0xb7   : > { %v1614_v62 = vsel %vm1613_vm9, %v1608_v61, %v1610_v57  ;;  %2064 = vmatpush3.msra.mxu1 %v1612_v60  ;;  %v1615_v63 = vsel %vm1613_vm9, %v1610_v57, %v1612_v60 }
  0xb8   : > { %1652 = vmatprep.subr.mxu0 %v1615_v63  ;;  %2066 = vmatmul.mubr.msk.f32.vlgmr.msra.gmra.mxu1 %vm341_vm2, %v1997_v59 }
  0xb9   : > { %1653 = vmatpush1.msra.mxu0 %v1614_v62 }
  0xba   : > { %1998 = vmatmul.mubr.msk.f32.vlgmr.msra.gmra.mxu0 %vm341_vm2, %v1997_v59 }
  0xc3   : > { %v1770_v52 = vpop.permute.xlu0 %1769 }
 0x14a   : > { %v482_v1 = vpop.f32.mrf.mxu1  ;;  %v411_v2 = vpop.f32.mrf.mxu0 }
 0x14c   : > { %v2027_v3 = vpop.f32.mrf.mxu1  ;;  %v413_v4 = vpop.f32.mrf.mxu0 }
 0x151   : > { %v570_v6 = vpop.f32.mrf.mxu0 }
 0x152   : > { %v641_v5 = vpop.f32.mrf.mxu1  ;;  %v571_v24 = vadd.f32 %v570_v6, %v411_v2 }
 0x153   : > { %v572_v8 = vpop.f32.mrf.mxu0  ;;  %v642_v21 = vadd.f32 %v641_v5, %v482_v1 }
 0x154   : > { %v2032_v7 = vpop.f32.mrf.mxu1  ;;  %v573_v27 = vadd.f32 %v572_v8, %v413_v4 }
 0x159   : > { %v802_v9 = vpop.f32.mrf.mxu1  ;;  %v731_v10 = vpop.f32.mrf.mxu0 }
 0x15a   : > { %v808_v28 = vadd.f32 %v802_v9, %v642_v21  ;;  %v806_v30 = vadd.f32 %v731_v10, %v571_v24 }
 0x15b   : > { %v2037_v11 = vpop.f32.mrf.mxu1  ;;  %v733_v12 = vpop.f32.mrf.mxu0 }
 0x15c   : > { %v807_v34 = vadd.f32 %v733_v12, %v573_v27  ;;  %v1795_v11 = vlaneseq }
 0x161   : > { %v895_v13 = vpop.f32.mrf.mxu0  ;;  %v966_v14 = vpop.f32.mrf.mxu1 }
 0x162   : > { %v972_v31 = vadd.f32 %v966_v14, %v808_v28  ;;  %v970_v35 = vadd.f32 %v895_v13, %v806_v30  ;;  %v1813_v30 = vld [vmem:[%s305_s15 + $0x8] sm:$0xff] }
 0x163   : > { %v897_v15 = vpop.f32.mrf.mxu0  ;;  %v2042_v16 = vpop.f32.mrf.mxu1 }
 0x164   : > { %v971_v38 = vadd.f32 %v897_v15, %v807_v34  ;;  %v1796_v15 = vshrl.u32 %v1795_v11, 7  ;;  %v1814_v34 = vld [vmem:[%s305_s15 + $0x10] sm:$0xff] }
 0x166   : > { %v1044_v17 = vpop.f32.mrf.mxu0  ;;  %v1115_v18 = vpop.f32.mrf.mxu1  ;;  %v1805_v16 = vsub.s32 2, %v1796_v15 }
 0x167   : > { %v1121_v36 = vadd.f32 %v1115_v18, %v972_v31  ;;  %v1119_v39 = vadd.f32 %v1044_v17, %v970_v35  ;;  %v1793_v17 = vld [vmem:[%s2358_s3 + $0x1] sm:$0x7]  ;;  %v1797_v18 = vsub.s32 0, %v1796_v15 }
 0x168   : > { %v1046_v19 = vpop.f32.mrf.mxu0  ;;  %v2047_v20 = vpop.f32.mrf.mxu1 }
 0x169   : > { %v1120_v43 = vadd.f32 %v1046_v19, %v971_v38  ;;  %v1806_v19 = vrot.slane %v1793_v17, %v1805_v16  ;;  %v1801_v20 = vsub.s32 1, %v1796_v15 }
 0x16a   : > { %v1205_v22 = vpop.f32.mrf.mxu0  ;;  %v1276_v23 = vpop.f32.mrf.mxu1 }
 0x16b   : > { %v1282_v40 = vadd.f32 %v1276_v23, %v1121_v36  ;;  %v1280_v44 = vadd.f32 %v1205_v22, %v1119_v39  ;;  %v1798_v23 = vrot.slane %v1793_v17, %v1797_v18  ;;  %v1802_v28 = vrot.slane %v1793_v17, %v1801_v20 }
 0x16c   : > { %v1207_v25 = vpop.f32.mrf.mxu0  ;;  %v2052_v26 = vpop.f32.mrf.mxu1 }
 0x16d   : > { %v1281_v47 = vadd.f32 %v1207_v25, %v1120_v43  ;;  %v1815_v25 = vld [vmem:[%s305_s15 + $0x18] sm:$0xff] }
 0x16e   : > { %v1437_v29 = vpop.f32.mrf.mxu1  ;;  %v1366_v32 = vpop.f32.mrf.mxu0 }
 0x16f   : > { %v1443_v45 = vadd.f32 %v1437_v29, %v1282_v40  ;;  %v1441_v48 = vadd.f32 %v1366_v32, %v1280_v44 }
 0x170   : > { %v2057_v33 = vpop.f32.mrf.mxu1  ;;  %v1368_v41 = vpop.f32.mrf.mxu0 }
 0x171   : > { %v1442_v53 = vadd.f32 %v1368_v41, %v1281_v47 }
 0x172   : > { %v1598_v37 = vpop.f32.mrf.mxu1 }
 0x173   : > { %v1604_v49 = vadd.f32 %v1598_v37, %v1443_v45 }
 0x174   : > { %v2062_v42 = vpop.f32.mrf.mxu1 }
 0x175   : > { %v1527_v46 = vpop.f32.mrf.mxu0 }
 0x176   : > { %v1602_v54 = vadd.f32 %v1527_v46, %v1441_v48 }
 0x177   : > { %v1529_v50 = vpop.f32.mrf.mxu0 }
 0x178   : > { %v1759_v51 = vpop.f32.mrf.mxu1  ;;  %v1603_v58 = vadd.f32 %v1529_v50, %v1442_v53 }
 0x179   : > { %v1765_v55 = vadd.f32 %v1759_v51, %v1604_v49 }
 0x17a   : > { %v1688_v56 = vpop.f32.mrf.mxu0  ;;  %v2067_v57 = vpop.f32.mrf.mxu1 }
 0x17b   : > { %v1774_v59 = vadd.f32 %v1770_v52, %v1765_v55  ;;  %v1763_v60 = vadd.f32 %v1688_v56, %v1602_v54 }
 0x17c   : > { %v1690_v61 = vpop.f32.mrf.mxu0 }
 0x17d   : > { %v1777_v62 = vsub.f32 0.0, %v1774_v59  ;;  %v1772_v63 = vadd.f32 %v1770_v52, %v1763_v60  ;;  %v1764_v1 = vadd.f32 %v1690_v61, %v1603_v58 }
 0x17f   : > { %v1782_v2 = vmul.f32 1.442695, %v1777_v62  ;;  %v1775_v3 = vsub.f32 0.0, %v1772_v63  ;;  %v1773_v4 = vadd.f32 %v1770_v52, %v1764_v1 }
 0x181   : > { %2104 = vpow2.f32 %v1782_v2  ;;  %v1778_v5 = vmul.f32 1.442695, %v1775_v3  ;;  %v1776_v6 = vsub.f32 0.0, %v1773_v4 }
 0x183   : > { %2106 = vpow2.f32 %v1778_v5  ;;  %v1780_v7 = vmul.f32 1.442695, %v1776_v6 }
 0x185   : > { %2108 = vpow2.f32 %v1780_v7 }
 0x18e   : > { %v2105_v8 = vpop.eup %2104 }
 0x18f   : > { %v1786_v9 = vadd.f32 1.0, %v2105_v8 }
 0x190   : > { %v2107_v10 = vpop.eup %2106 }
 0x191   : > { %2110 = vrcp.f32 %v1786_v9  ;;  %v1784_v12 = vadd.f32 1.0, %v2107_v10 }
 0x192   : > { %v2109_v13 = vpop.eup %2108 }
 0x193   : > { %2112 = vrcp.f32 %v1784_v12  ;;  %v1785_v14 = vadd.f32 1.0, %v2109_v13 }
 0x195   : > { %2114 = vrcp.f32 %v1785_v14 }
 0x19e   : > { %v2111_v21 = vpop.eup %2110 }
 0x19f   : > { %v1792_v22 = vmul.f32 %v2111_v21, %v1774_v59 }
 0x1a0   : > { %v2113_v24 = vpop.eup %2112 }
 0x1a1   : > { %v1812_v26 = vmul.f32 %v1806_v19, %v1792_v22  ;;  %v1790_v27 = vmul.f32 %v2113_v24, %v1772_v63 }
 0x1a2   : > { %v2115_v29 = vpop.eup %2114 }
 0x1a3   : > { %v1818_v31 = vadd.f32 %v1815_v25, %v1812_v26  ;;  %v1810_v32 = vmul.f32 %v1798_v23, %v1790_v27  ;;  %v1791_v33 = vmul.f32 %v2115_v29, %v1773_v4 }
 0x1a5   : > { %1823 = vst.msk [vmem:[%s2330_s10 + $0x18] sm:$0xff] %vm1822_vm10, %v1818_v31  ;;  %v1816_v35 = vadd.f32 %v1813_v30, %v1810_v32  ;;  %v1811_v36 = vmul.f32 %v1802_v28, %v1791_v33 }
 0x1a6   : > { %1825 = vst.msk [vmem:[%s2330_s10 + $0x18] sm:$0xff] %vm1824_vm11, %v2140_v0 }
 0x1a7   : > { %1820 = vst [vmem:[%s2330_s10 + $0x8] sm:$0xff] %v1816_v35  ;;  %v1817_v37 = vadd.f32 %v1814_v34, %v1811_v36 }
 0x1a9   : > { %1821 = vst [vmem:[%s2330_s10 + $0x10] sm:$0xff] %v1817_v37 }
 0x1aa PF: > { %s15_s20 = sadd.s32 1, %s2138_s20   ;;  %s2361_s18 = smov %s2134_s19 }
 0x1ab   : > { %p12_p5 = scmp.ge.s32.totalorder %s15_s20, 4   ;;  %s2362_s19 = smov %s2364_s21 }
 0x1ad   :  { %14 = sbr.rel (!%p12_p5) target bundleno = 2 (0x2), region = 87 }

</bundles_post_ra>
